<compile_context>
chip_gen: v5e
topology: v5e:2x2
jax: 0.10.0
libtpu: 0.0.40
codegen_flags: <defaults>
</compile_context>

<pallas_src>
import math

import jax
import jax.numpy as jnp
from jax.experimental import pallas as pl
from jax.experimental.pallas import tpu as pltpu

# --- config (small, consistent with a BERT-style config) ---
BATCH = 2
SEQ = 8
HIDDEN = 32
NUM_HEADS = 4
HEAD_DIM = HIDDEN // NUM_HEADS


def bert_attention_kernel(x_ref, wqkv_ref, bqkv_ref, wo_ref, bo_ref, out_ref):
    B, S, D = x_ref.shape
    H, dh = NUM_HEADS, HEAD_DIM
    M = B * S

    # --- fused QKV projection: ONE wide matmul, bf16 operands, f32 accumulate ---
    # Rows gathered with static sublane slices + leading concat (layout plumbing,
    # not compute); no replication of x across heads, no replication of weights.
    x2d = jnp.concatenate([x_ref[b] for b in range(B)], axis=0).astype(jnp.bfloat16)  # (M, D)
    qkv = jnp.dot(x2d, wqkv_ref[...],
                  preferred_element_type=jnp.float32) + bqkv_ref[...]                  # (M, 3D) f32

    # 1/sqrt(dh) was folded into Wq / bq in the wrapper.
    # Head split via static (sublane, lane) slices + leading-axis stack.
    # TODO(synk): at real widths (D=768, dh=64) pad each Q/K/V column group to a
    # 128-lane boundary in the fused weight (or emit three matmul outputs) so the
    # slices stay vreg-aligned.
    def gather_heads(col0):
        # (M, 3D) f32 -> (H*B, S, dh) bf16, batch index n = h*B + b
        return jnp.stack(
            [qkv[b * S:(b + 1) * S, col0 + h * dh:col0 + (h + 1) * dh]
             for h in range(H) for b in range(B)],
            axis=0).astype(jnp.bfloat16)

    q = gather_heads(0 * D)
    k = gather_heads(1 * D)
    v = gather_heads(2 * D)

    # --- attention, batched over (head, batch); softmax math in f32 ---
    s = jnp.einsum("nqd,nkd->nqk", q, k, preferred_element_type=jnp.float32)   # (HB,S,S)
    m = jnp.max(s, axis=-1, keepdims=True)
    p = jnp.exp(s - m)
    l = jnp.sum(p, axis=-1, keepdims=True)

    ctx = jnp.einsum("nqk,nkd->nqd", p.astype(jnp.bfloat16), v,
                     preferred_element_type=jnp.float32)                        # (HB,S,dh) f32
    # Normalize the small (S, dh) accumulator instead of the (S, S) prob tile;
    # the reciprocal rides the EUP slot.
    ctx = ctx * pl.reciprocal(l, approx=True)

    # --- output projection: merge heads back onto lanes, ONE matmul ---
    ctx2d = jnp.concatenate(
        [jnp.concatenate([ctx[h * B + b] for h in range(H)], axis=-1)           # (S, H*dh=D)
         for b in range(B)],
        axis=0).astype(jnp.bfloat16)                                             # (M, D)
    out = jnp.dot(ctx2d, wo_ref[...], preferred_element_type=jnp.float32) + bo_ref[...]
    for b in range(B):
        out_ref[b] = out[b * S:(b + 1) * S, :].astype(out_ref.dtype)


def _fuse_params(wq, bq, wk, bk, wv, bv, wo, bo):
    """Wrapper-side weight plumbing: fused QKV weight + scale folding."""
    scale = 1.0 / math.sqrt(HEAD_DIM)
    wqkv = jnp.concatenate([wq * scale, wk, wv], axis=1).astype(jnp.bfloat16)   # (D, 3D)
    bqkv = jnp.concatenate([bq * scale, bk, bv], axis=1).astype(jnp.float32)    # (1, 3D)
    return wqkv, bqkv, wo.astype(jnp.bfloat16), bo.astype(jnp.float32)


@jax.jit
def bert_attention(x, wq, bq, wk, bk, wv, bv, wo, bo):
    B, S, D = x.shape
    wqkv, bqkv, wo_b, bo_b = _fuse_params(wq, bq, wk, bk, wv, bv, wo, bo)
    vmem = lambda: pl.BlockSpec(memory_space=pltpu.MemorySpace.VMEM)
    # Gridless single invocation: at B=2, S=8, D=32 any grid is pure per-step
    # overhead (the "parallel" axis for v7x's 2 TCs belongs to the real-size
    # flash restructure, see TODO at top of file).
    return pl.pallas_call(
        bert_attention_kernel,
        out_shape=jax.ShapeDtypeStruct((B, S, D), jnp.float32),
        in_specs=[vmem() for _ in range(5)],
        out_specs=vmem(),
    )(x, wqkv, bqkv, wo_b, bo_b)


def reference_attention(x, wq, bq, wk, bk, wv, bv, wo, bo):
    """Pure-JAX f32 reference matching HuggingFace BertSelfAttention + output dense."""
    B, S, D = x.shape
    q = x @ wq + bq
    k = x @ wk + bk
    v = x @ wv + bv

    def split(t):  # (B, S, D) -> (B, H, S, d)
        return t.reshape(B, S, NUM_HEADS, HEAD_DIM).transpose(0, 2, 1, 3)

    qh, kh, vh = split(q), split(k), split(v)
    scores = jnp.einsum("bhqd,bhkd->bhqk", qh, kh) / jnp.sqrt(jnp.float32(HEAD_DIM))
    probs = jax.nn.softmax(scores, axis=-1)
    ctx = jnp.einsum("bhqk,bhkd->bhqd", probs, vh)
    ctx = ctx.transpose(0, 2, 1, 3).reshape(B, S, D)
    return ctx @ wo + bo


def init_params(key, hidden):
    keys = jax.random.split(key, 8)
    std = 0.02

    def lin(kw, kb):
        # stored as (in, out) so y = x @ W + b (matches nn.Linear with W = weight.T)
        w = jax.random.normal(kw, (hidden, hidden), jnp.float32) * std
        b = jax.random.normal(kb, (1, hidden), jnp.float32) * std
        return w, b

    wq, bq = lin(keys[0], keys[1])
    wk, bk = lin(keys[2], keys[3])
    wv, bv = lin(keys[4], keys[5])
    wo, bo = lin(keys[6], keys[7])
    return wq, bq, wk, bk, wv, bv, wo, bo


if __name__ == "__main__":
    key = jax.random.PRNGKey(0)
    k_x, k_p = jax.random.split(key)
    x = jax.random.normal(k_x, (BATCH, SEQ, HIDDEN), jnp.float32)
    params = init_params(k_p, HIDDEN)

    out = jax.block_until_ready(bert_attention(x, *params))
    ref = reference_attention(x, *params)

    assert out.shape == (BATCH, SEQ, HIDDEN)
    assert out.dtype == jnp.float32
    # bf16 MXU operands + approx reciprocal => looser tolerance than pure f32.
    assert jnp.allclose(out, ref, atol=1e-2, rtol=1e-2), "mismatch vs reference"
    print("KERNEL_OK")
</pallas_src>

<mosaic_0001>
module attributes {stable_mosaic.version = 11 : i64} {
  func.func @bert_attention_kernel(%arg0: memref<2x8x32xf32, #tpu.memory_space<vmem>>, %arg1: memref<32x96xbf16, #tpu.memory_space<vmem>>, %arg2: memref<1x96xf32, #tpu.memory_space<vmem>>, %arg3: memref<32x32xbf16, #tpu.memory_space<vmem>>, %arg4: memref<1x32xf32, #tpu.memory_space<vmem>>, %arg5: memref<2x8x32xf32, #tpu.memory_space<vmem>>) attributes {dimension_semantics = [], scalar_prefetch = 0 : i64, scratch_operands = 0 : i64, tpu.core_type = #tpu.core_type<tc>} {
    %c0 = arith.constant 0 : index
    %c0_0 = arith.constant 0 : index
    %c0_1 = arith.constant 0 : index
    %0 = vector.load %arg0[%c0, %c0_0, %c0_1] : memref<2x8x32xf32, #tpu.memory_space<vmem>>, vector<1x8x32xf32>
    %1 = vector.shape_cast %0 : vector<1x8x32xf32> to vector<8x32xf32>
    %c1 = arith.constant 1 : index
    %c0_2 = arith.constant 0 : index
    %c0_3 = arith.constant 0 : index
    %2 = vector.load %arg0[%c1, %c0_2, %c0_3] : memref<2x8x32xf32, #tpu.memory_space<vmem>>, vector<1x8x32xf32>
    %3 = vector.shape_cast %2 : vector<1x8x32xf32> to vector<8x32xf32>
    %4 = tpu.concatenate %1, %3 in 0 : vector<8x32xf32>, vector<8x32xf32> -> vector<16x32xf32>
    %5 = arith.truncf %4 : vector<16x32xf32> to vector<16x32xbf16>
    %c0_4 = arith.constant 0 : index
    %c0_5 = arith.constant 0 : index
    %6 = vector.load %arg1[%c0_4, %c0_5] : memref<32x96xbf16, #tpu.memory_space<vmem>>, vector<32x96xbf16>
    %cst = arith.constant dense<0.000000e+00> : vector<16x96xf32>
    %7 = tpu.matmul %5, %6, %cst {dimension_numbers = #tpu.dot_dimension_numbers<[1], [0], [0], [1], [0, 0, 1, 1], [], []>} : vector<16x32xbf16>, vector<32x96xbf16>, vector<16x96xf32> -> vector<16x96xf32>
    %c0_6 = arith.constant 0 : index
    %c0_7 = arith.constant 0 : index
    %8 = vector.load %arg2[%c0_6, %c0_7] : memref<1x96xf32, #tpu.memory_space<vmem>>, vector<1x96xf32>
    %9 = vector.broadcast %8 : vector<1x96xf32> to vector<16x96xf32>
    %10 = arith.addf %7, %9 : vector<16x96xf32>
    %11 = vector.extract_strided_slice %10 {offsets = [0, 0], sizes = [8, 8], strides = [1, 1]} : vector<16x96xf32> to vector<8x8xf32>
    %12 = vector.extract_strided_slice %10 {offsets = [8, 0], sizes = [8, 8], strides = [1, 1]} : vector<16x96xf32> to vector<8x8xf32>
    %13 = vector.extract_strided_slice %10 {offsets = [0, 8], sizes = [8, 8], strides = [1, 1]} : vector<16x96xf32> to vector<8x8xf32>
    %14 = vector.extract_strided_slice %10 {offsets = [8, 8], sizes = [8, 8], strides = [1, 1]} : vector<16x96xf32> to vector<8x8xf32>
    %15 = vector.extract_strided_slice %10 {offsets = [0, 16], sizes = [8, 8], strides = [1, 1]} : vector<16x96xf32> to vector<8x8xf32>
    %16 = vector.extract_strided_slice %10 {offsets = [8, 16], sizes = [8, 8], strides = [1, 1]} : vector<16x96xf32> to vector<8x8xf32>
    %17 = vector.extract_strided_slice %10 {offsets = [0, 24], sizes = [8, 8], strides = [1, 1]} : vector<16x96xf32> to vector<8x8xf32>
    %18 = vector.extract_strided_slice %10 {offsets = [8, 24], sizes = [8, 8], strides = [1, 1]} : vector<16x96xf32> to vector<8x8xf32>
    %19 = vector.shape_cast %11 : vector<8x8xf32> to vector<1x8x8xf32>
    %20 = vector.shape_cast %12 : vector<8x8xf32> to vector<1x8x8xf32>
    %21 = vector.shape_cast %13 : vector<8x8xf32> to vector<1x8x8xf32>
    %22 = vector.shape_cast %14 : vector<8x8xf32> to vector<1x8x8xf32>
    %23 = vector.shape_cast %15 : vector<8x8xf32> to vector<1x8x8xf32>
    %24 = vector.shape_cast %16 : vector<8x8xf32> to vector<1x8x8xf32>
    %25 = vector.shape_cast %17 : vector<8x8xf32> to vector<1x8x8xf32>
    %26 = vector.shape_cast %18 : vector<8x8xf32> to vector<1x8x8xf32>
    %27 = tpu.concatenate %19, %20, %21, %22, %23, %24, %25, %26 in 0 : vector<1x8x8xf32>, vector<1x8x8xf32>, vector<1x8x8xf32>, vector<1x8x8xf32>, vector<1x8x8xf32>, vector<1x8x8xf32>, vector<1x8x8xf32>, vector<1x8x8xf32> -> vector<8x8x8xf32>
    %28 = arith.truncf %27 : vector<8x8x8xf32> to vector<8x8x8xbf16>
    %29 = vector.extract_strided_slice %10 {offsets = [0, 32], sizes = [8, 8], strides = [1, 1]} : vector<16x96xf32> to vector<8x8xf32>
    %30 = vector.extract_strided_slice %10 {offsets = [8, 32], sizes = [8, 8], strides = [1, 1]} : vector<16x96xf32> to vector<8x8xf32>
    %31 = vector.extract_strided_slice %10 {offsets = [0, 40], sizes = [8, 8], strides = [1, 1]} : vector<16x96xf32> to vector<8x8xf32>
    %32 = vector.extract_strided_slice %10 {offsets = [8, 40], sizes = [8, 8], strides = [1, 1]} : vector<16x96xf32> to vector<8x8xf32>
    %33 = vector.extract_strided_slice %10 {offsets = [0, 48], sizes = [8, 8], strides = [1, 1]} : vector<16x96xf32> to vector<8x8xf32>
    %34 = vector.extract_strided_slice %10 {offsets = [8, 48], sizes = [8, 8], strides = [1, 1]} : vector<16x96xf32> to vector<8x8xf32>
    %35 = vector.extract_strided_slice %10 {offsets = [0, 56], sizes = [8, 8], strides = [1, 1]} : vector<16x96xf32> to vector<8x8xf32>
    %36 = vector.extract_strided_slice %10 {offsets = [8, 56], sizes = [8, 8], strides = [1, 1]} : vector<16x96xf32> to vector<8x8xf32>
    %37 = vector.shape_cast %29 : vector<8x8xf32> to vector<1x8x8xf32>
    %38 = vector.shape_cast %30 : vector<8x8xf32> to vector<1x8x8xf32>
    %39 = vector.shape_cast %31 : vector<8x8xf32> to vector<1x8x8xf32>
    %40 = vector.shape_cast %32 : vector<8x8xf32> to vector<1x8x8xf32>
    %41 = vector.shape_cast %33 : vector<8x8xf32> to vector<1x8x8xf32>
    %42 = vector.shape_cast %34 : vector<8x8xf32> to vector<1x8x8xf32>
    %43 = vector.shape_cast %35 : vector<8x8xf32> to vector<1x8x8xf32>
    %44 = vector.shape_cast %36 : vector<8x8xf32> to vector<1x8x8xf32>
    %45 = tpu.concatenate %37, %38, %39, %40, %41, %42, %43, %44 in 0 : vector<1x8x8xf32>, vector<1x8x8xf32>, vector<1x8x8xf32>, vector<1x8x8xf32>, vector<1x8x8xf32>, vector<1x8x8xf32>, vector<1x8x8xf32>, vector<1x8x8xf32> -> vector<8x8x8xf32>
    %46 = arith.truncf %45 : vector<8x8x8xf32> to vector<8x8x8xbf16>
    %47 = vector.extract_strided_slice %10 {offsets = [0, 64], sizes = [8, 8], strides = [1, 1]} : vector<16x96xf32> to vector<8x8xf32>
    %48 = vector.extract_strided_slice %10 {offsets = [8, 64], sizes = [8, 8], strides = [1, 1]} : vector<16x96xf32> to vector<8x8xf32>
    %49 = vector.extract_strided_slice %10 {offsets = [0, 72], sizes = [8, 8], strides = [1, 1]} : vector<16x96xf32> to vector<8x8xf32>
    %50 = vector.extract_strided_slice %10 {offsets = [8, 72], sizes = [8, 8], strides = [1, 1]} : vector<16x96xf32> to vector<8x8xf32>
    %51 = vector.extract_strided_slice %10 {offsets = [0, 80], sizes = [8, 8], strides = [1, 1]} : vector<16x96xf32> to vector<8x8xf32>
    %52 = vector.extract_strided_slice %10 {offsets = [8, 80], sizes = [8, 8], strides = [1, 1]} : vector<16x96xf32> to vector<8x8xf32>
    %53 = vector.extract_strided_slice %10 {offsets = [0, 88], sizes = [8, 8], strides = [1, 1]} : vector<16x96xf32> to vector<8x8xf32>
    %54 = vector.extract_strided_slice %10 {offsets = [8, 88], sizes = [8, 8], strides = [1, 1]} : vector<16x96xf32> to vector<8x8xf32>
    %55 = vector.shape_cast %47 : vector<8x8xf32> to vector<1x8x8xf32>
    %56 = vector.shape_cast %48 : vector<8x8xf32> to vector<1x8x8xf32>
    %57 = vector.shape_cast %49 : vector<8x8xf32> to vector<1x8x8xf32>
    %58 = vector.shape_cast %50 : vector<8x8xf32> to vector<1x8x8xf32>
    %59 = vector.shape_cast %51 : vector<8x8xf32> to vector<1x8x8xf32>
    %60 = vector.shape_cast %52 : vector<8x8xf32> to vector<1x8x8xf32>
    %61 = vector.shape_cast %53 : vector<8x8xf32> to vector<1x8x8xf32>
    %62 = vector.shape_cast %54 : vector<8x8xf32> to vector<1x8x8xf32>
    %63 = tpu.concatenate %55, %56, %57, %58, %59, %60, %61, %62 in 0 : vector<1x8x8xf32>, vector<1x8x8xf32>, vector<1x8x8xf32>, vector<1x8x8xf32>, vector<1x8x8xf32>, vector<1x8x8xf32>, vector<1x8x8xf32>, vector<1x8x8xf32> -> vector<8x8x8xf32>
    %64 = arith.truncf %63 : vector<8x8x8xf32> to vector<8x8x8xbf16>
    "tpu.trace_start"() <{level = 10 : i32, message = "nqd,nkd->nqk"}> : () -> ()
    %cst_8 = arith.constant dense<0.000000e+00> : vector<8x8x8xf32>
    %65 = tpu.matmul %28, %46, %cst_8 {dimension_numbers = #tpu.dot_dimension_numbers<[2], [2], [1], [1], [0, 0, 0, 1, 1, 1], [0], [0]>} : vector<8x8x8xbf16>, vector<8x8x8xbf16>, vector<8x8x8xf32> -> vector<8x8x8xf32>
    "tpu.trace_stop"() : () -> ()
    %cst_9 = arith.constant dense<0xFF800000> : vector<8x8xf32>
    %66 = vector.multi_reduction <maximumf>, %65, %cst_9 [2] : vector<8x8x8xf32> to vector<8x8xf32>
    %67 = vector.shape_cast %66 : vector<8x8xf32> to vector<8x8x1xf32>
    %68 = vector.broadcast %67 : vector<8x8x1xf32> to vector<8x8x8xf32>
    %69 = arith.subf %65, %68 : vector<8x8x8xf32>
    %70 = math.exp %69 : vector<8x8x8xf32>
    %cst_10 = arith.constant dense<0.000000e+00> : vector<8x8xf32>
    %71 = vector.multi_reduction <add>, %70, %cst_10 [2] : vector<8x8x8xf32> to vector<8x8xf32>
    %72 = vector.shape_cast %71 : vector<8x8xf32> to vector<8x8x1xf32>
    %73 = arith.truncf %70 : vector<8x8x8xf32> to vector<8x8x8xbf16>
    "tpu.trace_start"() <{level = 10 : i32, message = "nqk,nkd->nqd"}> : () -> ()
    %cst_11 = arith.constant dense<0.000000e+00> : vector<8x8x8xf32>
    %74 = tpu.matmul %73, %64, %cst_11 {dimension_numbers = #tpu.dot_dimension_numbers<[2], [1], [1], [2], [0, 0, 0, 1, 1, 2], [0], [0]>} : vector<8x8x8xbf16>, vector<8x8x8xbf16>, vector<8x8x8xf32> -> vector<8x8x8xf32>
    "tpu.trace_stop"() : () -> ()
    %75 = tpu.reciprocal %72 {approx = true} : vector<8x8x1xf32> -> vector<8x8x1xf32>
    %76 = vector.broadcast %75 : vector<8x8x1xf32> to vector<8x8x8xf32>
    %77 = arith.mulf %74, %76 : vector<8x8x8xf32>
    %78 = vector.extract_strided_slice %77 {offsets = [0, 0, 0], sizes = [1, 8, 8], strides = [1, 1, 1]} : vector<8x8x8xf32> to vector<1x8x8xf32>
    %79 = vector.shape_cast %78 : vector<1x8x8xf32> to vector<8x8xf32>
    %80 = vector.extract_strided_slice %77 {offsets = [2, 0, 0], sizes = [1, 8, 8], strides = [1, 1, 1]} : vector<8x8x8xf32> to vector<1x8x8xf32>
    %81 = vector.shape_cast %80 : vector<1x8x8xf32> to vector<8x8xf32>
    %82 = vector.extract_strided_slice %77 {offsets = [4, 0, 0], sizes = [1, 8, 8], strides = [1, 1, 1]} : vector<8x8x8xf32> to vector<1x8x8xf32>
    %83 = vector.shape_cast %82 : vector<1x8x8xf32> to vector<8x8xf32>
    %84 = vector.extract_strided_slice %77 {offsets = [6, 0, 0], sizes = [1, 8, 8], strides = [1, 1, 1]} : vector<8x8x8xf32> to vector<1x8x8xf32>
    %85 = vector.shape_cast %84 : vector<1x8x8xf32> to vector<8x8xf32>
    %86 = tpu.concatenate %79, %81, %83, %85 in 1 : vector<8x8xf32>, vector<8x8xf32>, vector<8x8xf32>, vector<8x8xf32> -> vector<8x32xf32>
    %87 = vector.extract_strided_slice %77 {offsets = [1, 0, 0], sizes = [1, 8, 8], strides = [1, 1, 1]} : vector<8x8x8xf32> to vector<1x8x8xf32>
    %88 = vector.shape_cast %87 : vector<1x8x8xf32> to vector<8x8xf32>
    %89 = vector.extract_strided_slice %77 {offsets = [3, 0, 0], sizes = [1, 8, 8], strides = [1, 1, 1]} : vector<8x8x8xf32> to vector<1x8x8xf32>
    %90 = vector.shape_cast %89 : vector<1x8x8xf32> to vector<8x8xf32>
    %91 = vector.extract_strided_slice %77 {offsets = [5, 0, 0], sizes = [1, 8, 8], strides = [1, 1, 1]} : vector<8x8x8xf32> to vector<1x8x8xf32>
    %92 = vector.shape_cast %91 : vector<1x8x8xf32> to vector<8x8xf32>
    %93 = vector.extract_strided_slice %77 {offsets = [7, 0, 0], sizes = [1, 8, 8], strides = [1, 1, 1]} : vector<8x8x8xf32> to vector<1x8x8xf32>
    %94 = vector.shape_cast %93 : vector<1x8x8xf32> to vector<8x8xf32>
    %95 = tpu.concatenate %88, %90, %92, %94 in 1 : vector<8x8xf32>, vector<8x8xf32>, vector<8x8xf32>, vector<8x8xf32> -> vector<8x32xf32>
    %96 = tpu.concatenate %86, %95 in 0 : vector<8x32xf32>, vector<8x32xf32> -> vector<16x32xf32>
    %97 = arith.truncf %96 : vector<16x32xf32> to vector<16x32xbf16>
    %c0_12 = arith.constant 0 : index
    %c0_13 = arith.constant 0 : index
    %98 = vector.load %arg3[%c0_12, %c0_13] : memref<32x32xbf16, #tpu.memory_space<vmem>>, vector<32x32xbf16>
    %cst_14 = arith.constant dense<0.000000e+00> : vector<16x32xf32>
    %99 = tpu.matmul %97, %98, %cst_14 {dimension_numbers = #tpu.dot_dimension_numbers<[1], [0], [0], [1], [0, 0, 1, 1], [], []>} : vector<16x32xbf16>, vector<32x32xbf16>, vector<16x32xf32> -> vector<16x32xf32>
    %c0_15 = arith.constant 0 : index
    %c0_16 = arith.constant 0 : index
    %100 = vector.load %arg4[%c0_15, %c0_16] : memref<1x32xf32, #tpu.memory_space<vmem>>, vector<1x32xf32>
    %101 = vector.broadcast %100 : vector<1x32xf32> to vector<16x32xf32>
    %102 = arith.addf %99, %101 : vector<16x32xf32>
    %103 = vector.extract_strided_slice %102 {offsets = [0, 0], sizes = [8, 32], strides = [1, 1]} : vector<16x32xf32> to vector<8x32xf32>
    %c0_17 = arith.constant 0 : index
    %c0_18 = arith.constant 0 : index
    %c0_19 = arith.constant 0 : index
    %104 = vector.load %arg5[%c0_17, %c0_18, %c0_19] : memref<2x8x32xf32, #tpu.memory_space<vmem>>, vector<1x8x32xf32>
    %105 = vector.shape_cast %104 : vector<1x8x32xf32> to vector<8x32xf32>
    %106 = vector.shape_cast %103 : vector<8x32xf32> to vector<1x8x32xf32>
    tpu.vector_store %arg5[%c0_17, %c0_18, %c0_19], %106 {strides = array<i32>} : memref<2x8x32xf32, #tpu.memory_space<vmem>>, vector<1x8x32xf32>,
    %107 = vector.extract_strided_slice %102 {offsets = [8, 0], sizes = [8, 32], strides = [1, 1]} : vector<16x32xf32> to vector<8x32xf32>
    %c1_20 = arith.constant 1 : index
    %c0_21 = arith.constant 0 : index
    %c0_22 = arith.constant 0 : index
    %108 = vector.load %arg5[%c1_20, %c0_21, %c0_22] : memref<2x8x32xf32, #tpu.memory_space<vmem>>, vector<1x8x32xf32>
    %109 = vector.shape_cast %108 : vector<1x8x32xf32> to vector<8x32xf32>
    %110 = vector.shape_cast %107 : vector<8x32xf32> to vector<1x8x32xf32>
    tpu.vector_store %arg5[%c1_20, %c0_21, %c0_22], %110 {strides = array<i32>} : memref<2x8x32xf32, #tpu.memory_space<vmem>>, vector<1x8x32xf32>,
    return
  }
}

</mosaic_0001>

<bundles_post_ra>
// kernel: bert_attention.1
= control target key start
LH: loop header
LB: loop body
LE: loop exit
PB: predicated region body
PF: predicated region fallthrough
CT: control target
= control target key end

     0   :  { %s940_s0 = inlined_call_operand.vmem [shape: f32[2,8,32], index: 0, kind: input, shape index: {}]   ;;  %s941_s1 = inlined_call_operand.vmem [shape: bf16[32,96], index: 1, kind: input, shape index: {}]   ;;  %s942_s2 = inlined_call_operand.vmem [shape: f32[1,96], index: 2, kind: input, shape index: {}]   ;;  %s943_s3 = inlined_call_operand.vmem [shape: bf16[32,32], index: 3, kind: input, shape index: {}]   ;;  %s944_s4 = inlined_call_operand.vmem [shape: f32[1,32], index: 4, kind: input, shape index: {}]   ;;  %s945_s5 = inlined_call_operand.hbm [shape: f32[2,8,32], index: 5, kind: output, shape index: {}]  }
   0x1   :  { %v677_v0 = vld [vmem:[%s941_s1 + $0x8] sm:$0xff]  ;;  %v676_v1 = vld [vmem:[%s941_s1] sm:$0xff] }
   0x2   :  { %v22_v2 = vld [vmem:[%s940_s0] sm:$0xff]  ;;  %56 = vmatpush.bf16.msra.mxu0 %v677_v0  ;;  %v641_v3 = vld [vmem:[%s940_s0 + $0x8] sm:$0xff] }
   0x3   :  { %10 = vsyncpa [#allocation3], 0  ;;  %v25_v4 = vpack.c.bf16 %v641_v3, %v22_v2  ;;  %vm46_vm0 = vcmask 261120   ;;  %v705_v5 = vld [vmem:[%s942_s2] ss:$0 sm:$0xff]  ;;  %s765_s1 = smov 112  }
   0x4   :  { %s766_s28 = smov 120   ;;  %s767_s0 = smov 104   ;;  %vm97_vm1 = vcmask 64512   ;;  %vm370_vm2 = vcmask 1043456   ;;  %vm563_vm3 = vcmask 130048   ;;  %vm565_vm4 = vcmask 195584  }
   0x5   :  { %s768_s2 = smov 96   ;;  %s769_s29 = smov 64  }
   0x6   :  { %57 = vmatpush.bf16.msra.mxu0 %v676_v1  ;;  %s770_s30 = smov 8   ;;  %s771_s6 = smov 16  }
   0x7   :  { %s772_s7 = smov 24   ;;  %s629_s15 = sshll.u32 %s945_s5, 4  ;;  %s630_s15 = int_to_ptr.hbm [resolvable:$true] %s629_s15 }
   0x8   :  { %s773_s16 = smov [#allocation2]   ;;  %s774_s18 = smov 128  }
   0x9   :  { %650 = vmatmul.msk.bf16.vlgmr.msra.gmra.mxu0 %vm46_vm0, %v25_v4  ;;  %s627_s17 = sshll.u32 %s773_s16, 4  ;;  %s628_s17 = int_to_ptr.vmem [resolvable:$true] %s627_s17 }
  0x86   :  { %v59_v6 = vpop.f32.mrf.mxu0 }
  0x87   :  { %v60_v7 = vadd.f32 %v705_v5, %v59_v6 }
  0x89   :  { %72 = vrot.lane.b32.xlu2 %v60_v7, %s765_s1  ;;  %65 = vrot.lane.b32.xlu0 %v60_v7, %s766_s28  ;;  %v84_v10 = vpack.c.bf16 %v60_v7, %v60_v7 }
  0x8b   :  { %v93_v12 = vunpack.c.l.b16 %v84_v10 }
  0x8d   :  { %v94_v14 = vpack.c.b16 %v93_v12, %v93_v12 }
  0x8e   :  { %v61_v8 = vpop.f32.mrf.mxu0 }
  0x8f   :  { %v62_v9 = vadd.f32 %v705_v5, %v61_v8 }
  0x91   :  { %75 = vrot.lane.b32.xlu1 %v62_v9, %s765_s1  ;;  %81 = vrot.lane.b32.xlu2 %v62_v9, %s767_s0  ;;  %v85_v11 = vpack.c.bf16 %v62_v9, %v62_v9 }
  0x92   :  { %69 = vrot.lane.b32.xlu0 %v62_v9, %s766_s28 }
  0x93   :  { %v118_v13 = vunpack.c.l.b16 %v85_v11 }
  0x95   :  { %v119_v15 = vpack.c.b16 %v118_v13, %v118_v13 }
  0x99   :  { %78 = vrot.lane.b32.xlu1 %v60_v7, %s767_s0  ;;  %95 = vrot.lane.b32.xlu2 %v94_v14, %s768_s2 }
  0x9a   :  { %120 = vrot.lane.b32.xlu0 %v119_v15, %s768_s2 }
  0xe3   :  { %v73_v16 = vpop.permute.xlu2 %72 }
  0xe4   :  { %v88_v32 = vpack.c.bf16 %v73_v16, %v73_v16 }
  0xe6   :  { %v190_v38 = vunpack.c.l.b16 %v88_v32 }
  0xe8   :  { %v836_v43 = vpack.c.b16 %v190_v38, %v190_v38 }
  0xeb   :  { %v82_v17 = vpop.permute.xlu2 %81 }
  0xec   :  { %v826_v30 = vpack.c.bf16 %v82_v17, %v82_v17 }
  0xee   :  { %v262_v35 = vunpack.c.l.b16 %v826_v30 }
  0xf0   :  { %v832_v41 = vpack.c.b16 %v262_v35, %v262_v35 }
  0xf3   :  { %v96_v18 = vpop.permute.xlu2 %95 }
  0xf4   :  { %v102_v19 = vsel %vm97_vm1, %v96_v18, 0 }
  0xf5   :  { %111 = vmatpush.bf16.xpose.msra.mxu1 %v102_v19 }
  0xfb   :  { %v66_v20 = vpop.permute.xlu0 %65 }
  0xfc   :  { %v86_v21 = vpack.c.bf16 %v66_v20, %v66_v20  ;;  %651 = vmatmul.msk.bf16.vlgmr.msra.gmra.mxu1 %vm97_vm1, %v84_v10 }
  0xfe   :  { %v142_v22 = vunpack.c.l.b16 %v86_v21 }
 0x100   :  { %v143_v23 = vpack.c.b16 %v142_v22, %v142_v22 }
 0x102   :  { %144 = vrot.lane.b32.xlu1 %v143_v23, %s768_s2 }
 0x103   :  { %v76_v24 = vpop.permute.xlu1 %75 }
 0x104   :  { %v89_v25 = vpack.c.bf16 %v76_v24, %v76_v24  ;;  %v70_v26 = vpop.permute.xlu0 %69 }
 0x105   :  { %v87_v27 = vpack.c.bf16 %v70_v26, %v70_v26 }
 0x106   :  { %v214_v28 = vunpack.c.l.b16 %v89_v25 }
 0x107   :  { %v166_v29 = vunpack.c.l.b16 %v87_v27 }
 0x108   :  { %v215_v31 = vpack.c.b16 %v214_v28, %v214_v28 }
 0x109   :  { %v167_v33 = vpack.c.b16 %v166_v29, %v166_v29 }
 0x10a   :  { %216 = vrot.lane.b32.xlu1 %v215_v31, %s768_s2 }
 0x10b   :  { %168 = vrot.lane.b32.xlu0 %v167_v33, %s768_s2  ;;  %v79_v34 = vpop.permute.xlu1 %78 }
 0x10c   :  { %v90_v36 = vpack.c.bf16 %v79_v34, %v79_v34  ;;  %v121_v37 = vpop.permute.xlu0 %120 }
 0x10d   :  { %v126_v39 = vsel %vm97_vm1, %v121_v37, 0 }
 0x10e   :  { %v238_v40 = vunpack.c.l.b16 %v90_v36  ;;  %135 = vmatpush.bf16.xpose.msra.mxu2 %v126_v39 }
 0x110   :  { %v834_v42 = vpack.c.b16 %v238_v40, %v238_v40 }
 0x112   :  { %264 = vrot.lane.b32.xlu1 %v832_v41, %s768_s2  ;;  %240 = vrot.lane.b32.xlu2 %v834_v42, %s768_s2 }
 0x113   :  { %192 = vrot.lane.b32.xlu0 %v836_v43, %s768_s2 }
 0x115   :  { %652 = vmatmul.msk.bf16.vlgmr.msra.gmra.mxu2 %vm97_vm1, %v85_v11 }
 0x11a   :  { %365 = vrot.lane.b32.xlu1 %v94_v14, %s769_s29  ;;  %387 = vrot.lane.b32.xlu2 %v119_v15, %s769_s29 }
 0x11b   :  { %408 = vrot.lane.b32.xlu0 %v143_v23, %s769_s29 }
 0x122   :  { %429 = vrot.lane.b32.xlu2 %v167_v33, %s769_s29 }
 0x123   :  { %471 = vrot.lane.b32.xlu0 %v215_v31, %s769_s29 }
 0x16c   :  { %v241_v44 = vpop.permute.xlu2 %240 }
 0x16d   :  { %v246_v47 = vsel %vm97_vm1, %v241_v44, 0 }
 0x174   :  { %v145_v45 = vpop.permute.xlu1 %144  ;;  %v388_v49 = vpop.permute.xlu2 %387 }
 0x175   :  { %v150_v46 = vsel %vm97_vm1, %v145_v45, 0  ;;  %v393_v54 = vsel %vm370_vm2, %v388_v49, 0 }
 0x176   :  { %159 = vmatpush.bf16.xpose.msra.mxu3 %v150_v46 }
 0x179   :  { %v113_v48 = vpop.f32.mrf.mxu1 }
 0x17a   :  { %v285_v50 = vsel %vm97_vm1, %v113_v48, -inf }
 0x17b   :  { %286 = vmax.xlane.f32.xlu1 %v285_v50 }
 0x17c   :  { %v217_v51 = vpop.permute.xlu1 %216  ;;  %v430_v57 = vpop.permute.xlu2 %429 }
 0x17d   :  { %v169_v52 = vpop.permute.xlu0 %168  ;;  %653 = vmatmul.msk.bf16.vlgmr.msra.gmra.mxu3 %vm97_vm1, %v86_v21  ;;  %v222_v53 = vsel %vm97_vm1, %v217_v51, 0  ;;  %v435_v62 = vsel %vm370_vm2, %v430_v57, 0 }
 0x17e   :  { %255 = vmatpush.bf16.xpose.msrb.mxu3 %v246_v47  ;;  %v174_v55 = vsel %vm97_vm1, %v169_v52, 0  ;;  %231 = vmatpush.bf16.xpose.msrb.mxu2 %v222_v53 }
 0x17f   :  { %183 = vmatpush.bf16.xpose.msrb.mxu0 %v174_v55 }
 0x181   :  { %v115_v56 = vpop.f32.mrf.mxu1 }
 0x184   :  { %v265_v58 = vpop.permute.xlu1 %264 }
 0x185   :  { %v270_v59 = vsel %vm97_vm1, %v265_v58, 0  ;;  %v193_v60 = vpop.permute.xlu0 %192  ;;  %656 = vmatmul.msk.bf16.vlgmr.msrb.gmra.mxu2 %vm97_vm1, %v89_v25 }
 0x186   :  { %402 = vmatpush.bf16.msra.mxu2 %v393_v54  ;;  %654 = vmatmul.msk.bf16.vlgmr.msrb.gmra.mxu0 %vm97_vm1, %v87_v27  ;;  %v198_v61 = vsel %vm97_vm1, %v193_v60, 0 }
 0x187   :  { %207 = vmatpush.bf16.xpose.msrb.mxu1 %v198_v61  ;;  %279 = vmatpush.bf16.xpose.msra.mxu0 %v270_v59 }
 0x18c   :  { %v366_v63 = vpop.permute.xlu1 %365 }
 0x18d   :  { %v409_v0 = vpop.permute.xlu0 %408  ;;  %v372_v1 = vsel %vm370_vm2, %v366_v63, 0  ;;  %657 = vmatmul.msk.bf16.vlgmr.msrb.gmra.mxu3 %vm97_vm1, %v90_v36 }
 0x18e   :  { %v414_v2 = vsel %vm370_vm2, %v409_v0, 0  ;;  %655 = vmatmul.msk.bf16.vlgmr.msrb.gmra.mxu1 %vm97_vm1, %v88_v32 }
 0x18f   :  { %444 = vmatpush.bf16.msrb.mxu0 %v435_v62  ;;  %381 = vmatpush.bf16.msra.mxu1 %v372_v1 }
 0x190   :  { %423 = vmatpush.bf16.msra.mxu3 %v414_v2 }
 0x195   :  { %v472_v3 = vpop.permute.xlu0 %471 }
 0x196   :  { %v477_v4 = vsel %vm370_vm2, %v472_v3, 0  ;;  %658 = vmatmul.msk.bf16.vlgmr.msra.gmra.mxu0 %vm97_vm1, %v826_v30 }
 0x197   :  { %486 = vmatpush.bf16.msrb.mxu2 %v477_v4 }
 0x198   :  { %v137_v5 = vpop.f32.mrf.mxu2 }
 0x199   :  { %v288_v6 = vsel %vm97_vm1, %v137_v5, -inf }
 0x19a   :  { %289 = vmax.xlane.f32.xlu2 %v288_v6 }
 0x1a0   :  { %v139_v7 = vpop.f32.mrf.mxu2 }
 0x1ee   :  { %v287_v8 = vpop.xlane.xlu1 %286 }
 0x1ef   :  { %v309_v9 = vsub.f32 %v113_v48, %v287_v8 }
 0x1f1   :  { %v317_v10 = vmul.f32 1.442695, %v309_v9 }
 0x1f3   :  { %707 = vpow2.f32 %v317_v10 }
 0x1f9   :  { %v870_v11 = vpop.eup %707 }
 0x1fa   :  { %v357_v12 = vpack.c.bf16 %v870_v11, %v870_v11  ;;  %v333_v7 = vsel %vm97_vm1, %v870_v11, 0.0 }
 0x1fc   :  { %659 = vmatmul.msk.bf16.vlgmr.msra.gmra.mxu1 %vm97_vm1, %v357_v12 }
 0x200   :  { %v161_v13 = vpop.f32.mrf.mxu3 }
 0x201   :  { %v291_v14 = vsel %vm97_vm1, %v161_v13, -inf }
 0x202   :  { %292 = vmax.xlane.f32.xlu0 %v291_v14 }
 0x203   :  { %v876_v15 = vpop.f32.mrf.mxu0 }
 0x204   :  { %v294_v31 = vsel %vm97_vm1, %v876_v15, -inf }
 0x208   :  { %v163_v16 = vpop.f32.mrf.mxu3  ;;  %v233_v17 = vpop.f32.mrf.mxu2 }
 0x209   :  { %v300_v18 = vsel %vm97_vm1, %v233_v17, -inf }
 0x20a   :  { %301 = vmax.xlane.f32.xlu1 %v300_v18 }
 0x20b   :  { %v187_v19 = vpop.f32.mrf.mxu0  ;;  %v209_v20 = vpop.f32.mrf.mxu1 }
 0x20c   :  { %v297_v21 = vsel %vm97_vm1, %v209_v20, -inf }
 0x20d   :  { %298 = vmax.xlane.f32.xlu2 %v297_v21  ;;  %v290_v22 = vpop.xlane.xlu2 %289 }
 0x20e   :  { %v310_v23 = vsub.f32 %v137_v5, %v290_v22 }
 0x210   :  { %v319_v24 = vmul.f32 1.442695, %v310_v23  ;;  %v235_v25 = vpop.f32.mrf.mxu2  ;;  %v257_v26 = vpop.f32.mrf.mxu3 }
 0x211   :  { %v303_v27 = vsel %vm97_vm1, %v257_v26, -inf }
 0x212   :  { %709 = vpow2.f32 %v319_v24  ;;  %304 = vmax.xlane.f32.xlu0 %v303_v27 }
 0x213   :  { %v211_v28 = vpop.f32.mrf.mxu1  ;;  %v281_v29 = vpop.f32.mrf.mxu0 }
 0x214   :  { %v306_v30 = vsel %vm97_vm1, %v281_v29, -inf }
 0x215   :  { %307 = vmax.xlane.f32.xlu1 %v306_v30  ;;  %295 = vmax.xlane.f32.xlu2 %v294_v31 }
 0x218   :  { %v884_v32 = vpop.eup %709  ;;  %v259_v33 = vpop.f32.mrf.mxu3 }
 0x219   :  { %v358_v34 = vpack.c.bf16 %v884_v32, %v884_v32  ;;  %v336_v18 = vsel %vm97_vm1, %v884_v32, 0.0 }
 0x21b   :  { %v283_v35 = vpop.f32.mrf.mxu0  ;;  %660 = vmatmul.msk.bf16.vlgmr.msra.gmra.mxu2 %vm97_vm1, %v358_v34 }
 0x226   :  { %513 = vrot.lane.b32.xlu0 %v832_v41, %s769_s29 }
 0x22d   :  { %492 = vrot.lane.b32.xlu2 %v834_v42, %s769_s29 }
 0x22e   :  { %450 = vrot.lane.b32.xlu1 %v836_v43, %s769_s29 }
 0x275   :  { %v293_v36 = vpop.xlane.xlu0 %292 }
 0x276   :  { %v311_v37 = vsub.f32 %v161_v13, %v293_v36 }
 0x278   :  { %v321_v38 = vmul.f32 1.442695, %v311_v37 }
 0x279   :  { %v895_v39 = vpop.f32.mrf.mxu1 }
 0x27a   :  { %711 = vpow2.f32 %v321_v38 }
 0x27d   :  { %v302_v40 = vpop.xlane.xlu1 %301 }
 0x27e   :  { %v314_v44 = vsub.f32 %v233_v17, %v302_v40 }
 0x280   :  { %v712_v45 = vpop.eup %711  ;;  %v327_v46 = vmul.f32 1.442695, %v314_v44  ;;  %v299_v47 = vpop.xlane.xlu2 %298 }
 0x281   :  { %v359_v48 = vpack.c.bf16 %v712_v45, %v712_v45  ;;  %v313_v49 = vsub.f32 %v209_v20, %v299_v47  ;;  %v385_v41 = vpop.f32.mrf.mxu1  ;;  %v339_v50 = vsel %vm97_vm1, %v712_v45, 0.0 }
 0x282   :  { %713 = vpow2.f32 %v327_v46  ;;  %340 = vadd.xlane.f32.xlu0 %v339_v50 }
 0x283   :  { %v325_v42 = vmul.f32 1.442695, %v313_v49  ;;  %661 = vmatmul.msk.bf16.vlgmr.msra.gmra.mxu3 %vm97_vm1, %v359_v48 }
 0x285   :  { %715 = vpow2.f32 %v325_v42  ;;  %v305_v43 = vpop.xlane.xlu0 %304 }
 0x286   :  { %v315_v51 = vsub.f32 %v257_v26, %v305_v43 }
 0x288   :  { %v714_v52 = vpop.eup %713  ;;  %v329_v53 = vmul.f32 1.442695, %v315_v51  ;;  %v308_v54 = vpop.xlane.xlu1 %307 }
 0x289   :  { %v296_v55 = vpop.xlane.xlu2 %295  ;;  %v362_v56 = vpack.c.bf16 %v714_v52, %v714_v52  ;;  %v316_v57 = vsub.f32 %v281_v29, %v308_v54  ;;  %v348_v59 = vsel %vm97_vm1, %v714_v52, 0.0  ;;  %v679_v54 = vld [vmem:[%s943_s3 + $0x8] sm:$0xff] }
 0x28a   :  { %v312_v58 = vsub.f32 %v876_v15, %v296_v55  ;;  %717 = vpow2.f32 %v329_v53  ;;  %349 = vadd.xlane.f32.xlu0 %v348_v59  ;;  %v678_v55 = vld [vmem:[%s943_s3] sm:$0xff] }
 0x28b   :  { %v716_v60 = vpop.eup %715  ;;  %v331_v61 = vmul.f32 1.442695, %v316_v57  ;;  %664 = vmatmul.msk.bf16.vlgmr.msrb.gmra.mxu2 %vm97_vm1, %v362_v56 }
 0x28c   :  { %v323_v62 = vmul.f32 1.442695, %v312_v58  ;;  %v345_v63 = vsel %vm97_vm1, %v716_v60, 0.0  ;;  %v361_v16 = vpack.c.bf16 %v716_v60, %v716_v60 }
 0x28d   :  { %719 = vpow2.f32 %v331_v61  ;;  %346 = vadd.xlane.f32.xlu1 %v345_v63 }
 0x28e   :  { %721 = vpow2.f32 %v323_v62 }
 0x290   :  { %v718_v0 = vpop.eup %717 }
 0x291   :  { %v493_v1 = vpop.permute.xlu2 %492  ;;  %v363_v3 = vpack.c.bf16 %v718_v0, %v718_v0  ;;  %v351_v13 = vsel %vm97_vm1, %v718_v0, 0.0 }
 0x292   :  { %v498_v2 = vsel %vm370_vm2, %v493_v1, 0 }
 0x293   :  { %507 = vmatpush.bf16.msrb.mxu3 %v498_v2  ;;  %v720_v4 = vpop.eup %719 }
 0x294   :  { %v722_v5 = vpop.eup %721  ;;  %v354_v6 = vsel %vm97_vm1, %v720_v4, 0.0  ;;  %v364_v17 = vpack.c.bf16 %v720_v4, %v720_v4 }
 0x295   :  { %v360_v8 = vpack.c.bf16 %v722_v5, %v722_v5  ;;  %355 = vadd.xlane.f32.xlu0 %v354_v6  ;;  %334 = vadd.xlane.f32.xlu1 %v333_v7  ;;  %v342_v9 = vsel %vm97_vm1, %v722_v5, 0.0 }
 0x296   :  { %343 = vadd.xlane.f32.xlu2 %v342_v9  ;;  %665 = vmatmul.msk.bf16.vlgmr.msrb.gmra.mxu3 %vm97_vm1, %v363_v3 }
 0x297   :  { %662 = vmatmul.msk.bf16.vlgmr.msrb.gmra.mxu0 %vm97_vm1, %v360_v8 }
 0x298   :  { %v514_v10 = vpop.permute.xlu0 %513 }
 0x299   :  { %v519_v12 = vsel %vm370_vm2, %v514_v10, 0 }
 0x29a   :  { %528 = vmatpush.bf16.msra.mxu0 %v519_v12 }
 0x29e   :  { %352 = vadd.xlane.f32.xlu2 %v351_v13  ;;  %v912_v14 = vpop.f32.mrf.mxu2 }
 0x2a0   :  { %v451_v11 = vpop.permute.xlu1 %450 }
 0x2a1   :  { %v456_v15 = vsel %vm370_vm2, %v451_v11, 0 }
 0x2a2   :  { %465 = vmatpush.bf16.msrb.mxu1 %v456_v15 }
 0x2a5   :  { %663 = vmatmul.msk.bf16.vlgmr.msrb.gmra.mxu1 %vm97_vm1, %v361_v16 }
 0x2a6   :  { %337 = vadd.xlane.f32.xlu2 %v336_v18  ;;  %v406_v19 = vpop.f32.mrf.mxu2  ;;  %612 = vmatpush.bf16.msra.mxu1 %v679_v54 }
 0x2a7   :  { %666 = vmatmul.msk.bf16.vlgmr.msra.gmra.mxu0 %vm97_vm1, %v364_v17 }
 0x2aa   :  { %613 = vmatpush.bf16.msra.mxu1 %v678_v55 }
 0x2f5   :  { %v341_v21 = vpop.xlane.xlu0 %340 }
 0x2f6   :  { %723 = vrcp.f32 %v341_v21 }
 0x2fc   :  { %v724_v25 = vpop.eup %723 }
 0x2fd   :  { %v350_v26 = vpop.xlane.xlu0 %349 }
 0x300   :  { %v347_v32 = vpop.xlane.xlu1 %346 }
 0x306   :  { %v425_v20 = vpop.f32.mrf.mxu3 }
 0x307   :  { %v544_v29 = vmul.f32 %v724_v25, %v425_v20 }
 0x308   :  { %v356_v36 = vpop.xlane.xlu0 %355  ;;  %v335_v56 = vpop.xlane.xlu1 %334 }
 0x309   :  { %v344_v22 = vpop.xlane.xlu2 %343 }
 0x30a   :  { %725 = vrcp.f32 %v344_v22 }
 0x30b   :  { %727 = vrcp.f32 %v350_v26 }
 0x30c   :  { %729 = vrcp.f32 %v347_v32 }
 0x30e   :  { %v427_v23 = vpop.f32.mrf.mxu3  ;;  %v488_v24 = vpop.f32.mrf.mxu2 }
 0x310   :  { %v726_v27 = vpop.eup %725 }
 0x311   :  { %v353_v34 = vpop.xlane.xlu2 %352  ;;  %v728_v38 = vpop.eup %727 }
 0x312   :  { %731 = vrcp.f32 %v353_v34  ;;  %v730_v40 = vpop.eup %729  ;;  %v547_v47 = vmul.f32 %v728_v38, %v488_v24 }
 0x313   :  { %733 = vrcp.f32 %v356_v36 }
 0x314   :  { %v446_v28 = vpop.f32.mrf.mxu0  ;;  %735 = vrcp.f32 %v335_v56 }
 0x315   :  { %v545_v30 = vmul.f32 %v726_v27, %v446_v28 }
 0x316   :  { %v490_v31 = vpop.f32.mrf.mxu2 }
 0x317   :  { %v690_v33 = vpack.i.bf16 %v545_v30, %v544_v29 }
 0x318   :  { %v732_v45 = vpop.eup %731 }
 0x319   :  { %v509_v35 = vpop.f32.mrf.mxu3  ;;  %691 = vrot.lane.b32.xlu0 %v690_v33, %s770_s30  ;;  %v734_v49 = vpop.eup %733 }
 0x31a   :  { %v548_v50 = vmul.f32 %v732_v45, %v509_v35  ;;  %v338_v57 = vpop.xlane.xlu2 %337  ;;  %v736_v59 = vpop.eup %735 }
 0x31b   :  { %737 = vrcp.f32 %v338_v57  ;;  %v542_v0 = vmul.f32 %v736_v59, %v895_v39  ;;  %v706_v39 = vld [vmem:[%s944_s4] ss:$0 sm:$0xff] }
 0x31c   :  { %v448_v37 = vpop.f32.mrf.mxu0 }
 0x321   :  { %v511_v44 = vpop.f32.mrf.mxu3  ;;  %v738_v60 = vpop.eup %737 }
 0x322   :  { %v467_v46 = vpop.f32.mrf.mxu1  ;;  %v543_v1 = vmul.f32 %v738_v60, %v912_v14 }
 0x323   :  { %v546_v48 = vmul.f32 %v730_v40, %v467_v46 }
 0x324   :  { %v530_v41 = vpop.f32.mrf.mxu0 }
 0x325   :  { %v695_v42 = vpack.i.bf16 %v547_v47, %v546_v48  ;;  %v549_v43 = vmul.f32 %v734_v49, %v530_v41 }
 0x327   :  { %v700_v51 = vpack.i.bf16 %v549_v43, %v548_v50  ;;  %696 = vrot.lane.b32.xlu1 %v695_v42, %s771_s6 }
 0x329   :  { %701 = vrot.lane.b32.xlu2 %v700_v51, %s772_s7 }
 0x32a   :  { %v469_v52 = vpop.f32.mrf.mxu1 }
 0x32c   :  { %v532_v53 = vpop.f32.mrf.mxu0 }
 0x383   :  { %v702_v63 = vpop.permute.xlu2 %701 }
 0x384   :  { %v704_v5 = vunpack.i.h.bf16 %v702_v63  ;;  %v703_v6 = vunpack.i.l.bf16 %v702_v63 }
 0x38b   :  { %v692_v58 = vpop.permute.xlu0 %691 }
 0x38c   :  { %v694_v61 = vunpack.i.h.bf16 %v692_v58  ;;  %v693_v62 = vunpack.i.l.bf16 %v692_v58 }
 0x38e   :  { %v562_v7 = vsel %vm97_vm1, %v542_v0, %v693_v62  ;;  %v579_v8 = vsel %vm97_vm1, %v543_v1, %v694_v61 }
 0x399   :  { %v697_v2 = vpop.permute.xlu1 %696 }
 0x39a   :  { %v699_v3 = vunpack.i.h.bf16 %v697_v2  ;;  %v698_v4 = vunpack.i.l.bf16 %v697_v2 }
 0x39c   :  { %v564_v9 = vsel %vm563_vm3, %v562_v7, %v698_v4  ;;  %v580_v10 = vsel %vm563_vm3, %v579_v8, %v699_v3 }
 0x39d   :  { %v566_v12 = vsel %vm565_vm4, %v564_v9, %v703_v6  ;;  %v581_v13 = vsel %vm565_vm4, %v580_v10, %v704_v5 }
 0x39e   :  { %v582_v11 = vpack.c.bf16 %v581_v13, %v566_v12 }
 0x3a0   :  { %675 = vmatmul.msk.bf16.vlgmr.msra.gmra.mxu1 %vm46_vm0, %v582_v11 }
 0x41d   :  { %v615_v14 = vpop.f32.mrf.mxu1 }
 0x41e   :  { %v616_v15 = vadd.f32 %v706_v39, %v615_v14 }
 0x420   :  { %620 = vst.msk [vmem:[#allocation2] sm:$0xff] %vm46_vm0, %v616_v15 }
 0x425   :  { %v617_v16 = vpop.f32.mrf.mxu1 }
 0x426   :  { %v618_v17 = vadd.f32 %v706_v39, %v617_v16 }
 0x428   :  { %622 = vst.msk [vmem:[#allocation2 + $0x8] sm:$0xff] %vm46_vm0, %v618_v17 }
 0x429   :  { %635 = dma.vmem_to_hbm [thread:$0]  %s628_s17, 256, %s630_s15, [#allocation3], %s774_s18, %s774_s18, %s770_s30  }
 0x42a   :  { %763 = dma.done.wait [#allocation3], 256  }
 0x42b   :  { %764 = vsyncadd [#allocation3], 4294967040 }
 0x42c   :  { %640 = vsyncpa [#allocation3], 1 }

</bundles_post_ra>
